<compile_context>
chip_gen: v7x
topology: tpu7x:2x2x1
jax: 0.10.0
libtpu: 0.0.40
codegen_flags: <defaults>
</compile_context>

<pallas_src>
import math

import jax
import jax.numpy as jnp
from jax.experimental import pallas as pl
from jax.experimental.pallas import tpu as pltpu


def _round_up(n, m):
    return ((n + m - 1) // m) * m


def _erf_f32(x):
    # Abramowitz & Stegun 7.1.26 rational approximation, |err| <= 1.5e-7.
    # exp -> EUP, reciprocal (approx) -> EUP, rest -> VPU mul/add/where.
    a1 = 0.254829592
    a2 = -0.284496736
    a3 = 1.421413741
    a4 = -1.453152027
    a5 = 1.061405429
    p = 0.3275911
    ax = jnp.abs(x)
    t = pl.reciprocal(1.0 + p * ax, approx=True)   # EUP slot, frees the VALU
    poly = ((((a5 * t + a4) * t + a3) * t + a2) * t + a1) * t
    y = 1.0 - poly * jnp.exp(-ax * ax)
    return jnp.where(x >= 0.0, y, -y)


def _gelu_exact(x):
    # Matches torch.nn.GELU() default (approximate='none'):
    #   0.5 * x * (1 + erf(x / sqrt(2)))
    return 0.5 * x * (1.0 + _erf_f32(x * 0.7071067811865476))


def _mlp_kernel(x_ref, w1_ref, b1_ref, w2_ref, b2_ref, o_ref, acc_ref):
    # x_ref : (TM, Dp)  bf16 row tile of flattened tokens
    # w1_ref: (Dp, HK)  bf16 hidden-column tile of W1
    # b1_ref: (1, HK)   f32
    # w2_ref: (HK, Op)  bf16 hidden-row tile of W2
    # b2_ref: (1, Op)   f32 (resident)
    # o_ref : (TM, Op)  output row tile (written only on the last hidden step)
    # acc_ref: (TM, Op) f32 accumulator scratch (persists across the grid)
    kh = pl.program_id(1)

    @pl.when(kh == 0)
    def _():
        acc_ref[...] = jnp.zeros_like(acc_ref)

    # (TM, Dp) @ (Dp, HK) on the MXU: bf16 inputs, f32 accumulation.
    h = jnp.dot(x_ref[...], w1_ref[...], preferred_element_type=jnp.float32)
    h = _gelu_exact(h + b1_ref[...])
    # (TM, HK) @ (HK, Op): cast the activation stream back to bf16 for the MXU.
    acc_ref[...] += jnp.dot(h.astype(w2_ref.dtype), w2_ref[...],
                            preferred_element_type=jnp.float32)

    @pl.when(kh == pl.num_programs(1) - 1)
    def _():
        o_ref[...] = (acc_ref[...] + b2_ref[...]).astype(o_ref.dtype)


# ---- tiling heuristics -------------------------------------------------------

_VMEM_TILE_BUDGET = 48 * 1024 * 1024   # keep live tiles under this
_VMEM_LIMIT_BYTES = 56 * 1024 * 1024   # safe on v7x (64 MiB), > defaults everywhere


def _choose_tm(M):
    if M <= 512:
        # >= 2 row-grid steps where possible so v7x's two TCs both get work.
        return _round_up(max(1, (M + 1) // 2), 8)
    # Minimize row padding among lane/sublane-friendly tile sizes (ties -> larger).
    return min((512, 384, 256, 128),
               key=lambda t: (_round_up(M, t) - M, -t))


def _choose_hk(Hp):
    if Hp <= 512:
        return Hp
    for c in (512, 384, 256, 128):
        if Hp % c == 0:
            return c
    return 128


def _tile_vmem_bytes(TM, Dp, HK, Op, out_bytes):
    bf = 2
    return (2 * TM * Dp * bf          # x tile (double-buffered)
            + 2 * Dp * HK * bf        # W1 tile
            + 2 * HK * Op * bf        # W2 tile
            + 2 * (HK + Op) * 4       # biases (f32)
            + 2 * TM * Op * out_bytes # output tile
            + TM * Op * 4)            # f32 accumulator scratch


# ---- host-side packing + forward --------------------------------------------

def pack_params(params, *, in_features, hidden_features, out_features):
    """Pad to (8,128)-dense shapes and cast matmul operands to bf16 — once."""
    Dp = _round_up(in_features, 128)
    Hp = _round_up(hidden_features, 128)
    Op = _round_up(out_features, 128)
    w1p = jnp.pad(params["w1"],
                  ((0, Dp - in_features), (0, Hp - hidden_features))
                  ).astype(jnp.bfloat16)
    b1p = jnp.pad(params["b1"].reshape(1, -1),
                  ((0, 0), (0, Hp - hidden_features))).astype(jnp.float32)
    w2p = jnp.pad(params["w2"],
                  ((0, Hp - hidden_features), (0, Op - out_features))
                  ).astype(jnp.bfloat16)
    b2p = jnp.pad(params["b2"].reshape(1, -1),
                  ((0, 0), (0, Op - out_features))).astype(jnp.float32)
    return {"w1p": w1p, "b1p": b1p, "w2p": w2p, "b2p": b2p,
            "d_in": in_features, "d_out": out_features}


def mlp_forward(x, packed):
    """Fused Linear -> GELU -> Linear on pre-packed (padded, bf16) weights."""
    d_in, d_out = packed["d_in"], packed["d_out"]
    w1p, b1p, w2p, b2p = packed["w1p"], packed["b1p"], packed["w2p"], packed["b2p"]
    Dp, Hp = w1p.shape
    Op = w2p.shape[1]

    lead = x.shape[:-1]
    x2 = x.reshape(-1, d_in)
    M = x2.shape[0]
    out_dtype = x.dtype
    out_bytes = jnp.dtype(out_dtype).itemsize

    HK = _choose_hk(Hp)
    TM = _choose_tm(M)
    while _tile_vmem_bytes(TM, Dp, HK, Op, out_bytes) > _VMEM_TILE_BUDGET and TM > 8:
        TM = max(8, _round_up(TM // 2, 8))
    Mp = _round_up(M, TM)

    # Only the activation pad stays on the per-call path.
    xp = jnp.pad(x2, ((0, Mp - M), (0, Dp - d_in))).astype(jnp.bfloat16)

    grid = (Mp // TM, Hp // HK)

    flops = 2 * Mp * (Dp * Hp + Hp * Op)
    bytes_accessed = (Mp * Dp * 2 + Dp * Hp * 2 + Hp * Op * 2
                      + (Hp + Op) * 4 + Mp * Op * out_bytes)

    out = pl.pallas_call(
        _mlp_kernel,
        out_shape=jax.ShapeDtypeStruct((Mp, Op), out_dtype),
        grid=grid,
        in_specs=[
            pl.BlockSpec((TM, Dp), lambda i, k: (i, 0)),   # x row tile
            pl.BlockSpec((Dp, HK), lambda i, k: (0, k)),   # W1 hidden-column tile
            pl.BlockSpec((1, HK), lambda i, k: (0, k)),    # b1 tile
            pl.BlockSpec((HK, Op), lambda i, k: (k, 0)),   # W2 hidden-row tile
            pl.BlockSpec((1, Op), lambda i, k: (0, 0)),    # b2 (resident)
        ],
        out_specs=pl.BlockSpec((TM, Op), lambda i, k: (i, 0)),
        scratch_shapes=[pltpu.VMEM((TM, Op), jnp.float32)],
        compiler_params=pltpu.CompilerParams(
            dimension_semantics=("parallel", "arbitrary"),
            vmem_limit_bytes=_VMEM_LIMIT_BYTES,
        ),
        cost_estimate=pl.CostEstimate(
            flops=flops, transcendentals=Mp * Hp, bytes_accessed=bytes_accessed),
    )(xp, w1p, b1p, w2p, b2p)

    return out[:M, :d_out].reshape(*lead, d_out)


class MultiLayerPerceptron:
    """JAX/Pallas equivalent of the PyTorch `multi_layer_perseptron` module."""

    def __init__(self, in_features, hidden_features=None, out_features=None, drop=0.0):
        self.in_features = in_features
        self.hidden_features = hidden_features or in_features
        self.out_features = out_features or in_features
        self.drop = float(drop)

    def init(self, key):
        # nn.Linear default init: U(-1/sqrt(fan_in), 1/sqrt(fan_in))
        k1, k2, k3, k4 = jax.random.split(key, 4)
        lim1 = 1.0 / math.sqrt(self.in_features)
        lim2 = 1.0 / math.sqrt(self.hidden_features)
        w1 = jax.random.uniform(k1, (self.in_features, self.hidden_features),
                                minval=-lim1, maxval=lim1, dtype=jnp.float32)
        b1 = jax.random.uniform(k2, (self.hidden_features,),
                                minval=-lim1, maxval=lim1, dtype=jnp.float32)
        w2 = jax.random.uniform(k3, (self.hidden_features, self.out_features),
                                minval=-lim2, maxval=lim2, dtype=jnp.float32)
        b2 = jax.random.uniform(k4, (self.out_features,),
                                minval=-lim2, maxval=lim2, dtype=jnp.float32)
        return {"w1": w1, "b1": b1, "w2": w2, "b2": b2}

    def pack(self, params):
        return pack_params(params, in_features=self.in_features,
                           hidden_features=self.hidden_features,
                           out_features=self.out_features)

    def __call__(self, params, x, *, train=False, key=None):
        packed = params if "w1p" in params else self.pack(params)
        y = mlp_forward(x, packed)
        if train and self.drop > 0.0:
            # nn.Dropout (inverted dropout) as plain-JAX glue; identity for the
            # module default drop=0 or eval mode.
            keep = 1.0 - self.drop
            mask = jax.random.bernoulli(key, keep, y.shape)
            y = jnp.where(mask, y / keep, 0.0).astype(y.dtype)
        return y


if __name__ == "__main__":
    key = jax.random.PRNGKey(0)
    kp, kx = jax.random.split(key)

    # Small ViT-style shapes: batch=2, seq=8, in_features=32, hidden=32.
    B, N, D = 2, 8, 32
    mlp = MultiLayerPerceptron(in_features=D, hidden_features=32, out_features=D, drop=0.0)
    params = mlp.init(kp)
    packed = mlp.pack(params)          # pad + bf16-cast the weights once
    x = jax.random.normal(kx, (B, N, D), dtype=jnp.float32)

    y = mlp(packed, x)
    jax.block_until_ready(y)

    # Pure-JAX f32 reference: Linear -> exact GELU -> Linear -> Dropout(0)=id.
    h = x @ params["w1"] + params["b1"]
    h = jax.nn.gelu(h, approximate=False)
    ref = h @ params["w2"] + params["b2"]

    assert y.shape == ref.shape, (y.shape, ref.shape)
    max_err = float(jnp.max(jnp.abs(y - ref)))
    # Tolerance loosened vs the f32 reference because the kernel feeds the MXU
    # bf16 operands (f32 accumulation); error budget is dominated by bf16
    # input rounding, not the erf polynomial / approx reciprocal.
    assert jnp.allclose(y, ref, rtol=5e-2, atol=5e-2), \
        f"MLP kernel mismatch, max_err={max_err}"

    print("KERNEL_OK")
</pallas_src>

<mosaic_0001>
module attributes {stable_mosaic.version = 11 : i64} {
  func.func @_mlp_kernel(%arg0: i32, %arg1: i32, %arg2: memref<8x128xbf16, #tpu.memory_space<vmem>>, %arg3: memref<128x128xbf16, #tpu.memory_space<vmem>>, %arg4: memref<1x128xf32, #tpu.memory_space<vmem>>, %arg5: memref<128x128xbf16, #tpu.memory_space<vmem>>, %arg6: memref<1x128xf32, #tpu.memory_space<vmem>>, %arg7: memref<8x128xf32, #tpu.memory_space<vmem>>, %arg8: memref<8x128xf32, #tpu.memory_space<vmem>>) attributes {dimension_semantics = [#tpu.dimension_semantics<parallel>, #tpu.dimension_semantics<arbitrary>], iteration_bounds = array<i64: 2, 1>, scalar_prefetch = 0 : i64, scratch_operands = 1 : i64, tpu.core_type = #tpu.core_type<tc>, window_params = [{transform_indices = @transform_0, window_bounds = array<i64: 8, 128>}, {transform_indices = @transform_1, window_bounds = array<i64: 128, 128>}, {transform_indices = @transform_2, window_bounds = array<i64: 1, 128>}, {transform_indices = @transform_3, window_bounds = array<i64: 128, 128>}, {pipeline_mode = #tpu.pipeline_mode<synchronous>, transform_indices = @transform_4, window_bounds = array<i64: 1, 128>}, {transform_indices = @transform_5, window_bounds = array<i64: 8, 128>}]} {
    %c0_i32 = arith.constant 0 : i32
    %0 = arith.cmpi eq, %arg1, %c0_i32 : i32
    %1 = arith.extui %0 : i1 to i32
    %c0_i32_0 = arith.constant 0 : i32
    %2 = arith.cmpi ne, %1, %c0_i32_0 : i32
    scf.if %2 {
      %cst_29 = arith.constant 0.000000e+00 : f32
      %57 = vector.broadcast %cst_29 : f32 to vector<8x128xf32>
      %c0_30 = arith.constant 0 : index
      %c0_31 = arith.constant 0 : index
      %58 = vector.load %arg8[%c0_30, %c0_31] : memref<8x128xf32, #tpu.memory_space<vmem>>, vector<8x128xf32>
      tpu.vector_store %arg8[%c0_30, %c0_31], %57 {strides = array<i32>} : memref<8x128xf32, #tpu.memory_space<vmem>>, vector<8x128xf32>,
    } else {
    }
    %c0 = arith.constant 0 : index
    %c0_1 = arith.constant 0 : index
    %3 = vector.load %arg2[%c0, %c0_1] : memref<8x128xbf16, #tpu.memory_space<vmem>>, vector<8x128xbf16>
    %c0_2 = arith.constant 0 : index
    %c0_3 = arith.constant 0 : index
    %4 = vector.load %arg3[%c0_2, %c0_3] : memref<128x128xbf16, #tpu.memory_space<vmem>>, vector<128x128xbf16>
    %cst = arith.constant dense<0.000000e+00> : vector<8x128xf32>
    %5 = tpu.matmul %3, %4, %cst {dimension_numbers = #tpu.dot_dimension_numbers<[1], [0], [0], [1], [0, 0, 1, 1], [], []>} : vector<8x128xbf16>, vector<128x128xbf16>, vector<8x128xf32> -> vector<8x128xf32>
    %c0_4 = arith.constant 0 : index
    %c0_5 = arith.constant 0 : index
    %6 = vector.load %arg4[%c0_4, %c0_5] : memref<1x128xf32, #tpu.memory_space<vmem>>, vector<1x128xf32>
    %7 = vector.broadcast %6 : vector<1x128xf32> to vector<8x128xf32>
    %8 = arith.addf %5, %7 : vector<8x128xf32>
    %cst_6 = arith.constant 5.000000e-01 : f32
    %9 = vector.broadcast %cst_6 : f32 to vector<8x128xf32>
    %10 = arith.mulf %9, %8 : vector<8x128xf32>
    %cst_7 = arith.constant 0.707106769 : f32
    %11 = vector.broadcast %cst_7 : f32 to vector<8x128xf32>
    %12 = arith.mulf %8, %11 : vector<8x128xf32>
    %13 = math.absf %12 : vector<8x128xf32>
    %cst_8 = arith.constant 0.327591091 : f32
    %14 = vector.broadcast %cst_8 : f32 to vector<8x128xf32>
    %15 = arith.mulf %14, %13 : vector<8x128xf32>
    %cst_9 = arith.constant 1.000000e+00 : f32
    %16 = vector.broadcast %cst_9 : f32 to vector<8x128xf32>
    %17 = arith.addf %16, %15 : vector<8x128xf32>
    %18 = tpu.reciprocal %17 {approx = true} : vector<8x128xf32> -> vector<8x128xf32>
    %cst_10 = arith.constant 1.06140542 : f32
    %19 = vector.broadcast %cst_10 : f32 to vector<8x128xf32>
    %20 = arith.mulf %19, %18 : vector<8x128xf32>
    %cst_11 = arith.constant -1.45315206 : f32
    %21 = vector.broadcast %cst_11 : f32 to vector<8x128xf32>
    %22 = arith.addf %20, %21 : vector<8x128xf32>
    %23 = arith.mulf %22, %18 : vector<8x128xf32>
    %cst_12 = arith.constant 1.42141378 : f32
    %24 = vector.broadcast %cst_12 : f32 to vector<8x128xf32>
    %25 = arith.addf %23, %24 : vector<8x128xf32>
    %26 = arith.mulf %25, %18 : vector<8x128xf32>
    %cst_13 = arith.constant -0.284496725 : f32
    %27 = vector.broadcast %cst_13 : f32 to vector<8x128xf32>
    %28 = arith.addf %26, %27 : vector<8x128xf32>
    %29 = arith.mulf %28, %18 : vector<8x128xf32>
    %cst_14 = arith.constant 0.254829586 : f32
    %30 = vector.broadcast %cst_14 : f32 to vector<8x128xf32>
    %31 = arith.addf %29, %30 : vector<8x128xf32>
    %32 = arith.mulf %31, %18 : vector<8x128xf32>
    %cst_15 = arith.constant 0.000000e+00 : f32
    %33 = vector.broadcast %cst_15 : f32 to vector<8x128xf32>
    %34 = arith.subf %33, %13 : vector<8x128xf32>
    %35 = arith.mulf %34, %13 : vector<8x128xf32>
    %36 = math.exp %35 : vector<8x128xf32>
    %37 = arith.mulf %32, %36 : vector<8x128xf32>
    %cst_16 = arith.constant 1.000000e+00 : f32
    %38 = vector.broadcast %cst_16 : f32 to vector<8x128xf32>
    %39 = arith.subf %38, %37 : vector<8x128xf32>
    %cst_17 = arith.constant 0.000000e+00 : f32
    %40 = vector.broadcast %cst_17 : f32 to vector<8x128xf32>
    %41 = arith.cmpf oge, %12, %40 : vector<8x128xf32>
    %cst_18 = arith.constant 0.000000e+00 : f32
    %42 = vector.broadcast %cst_18 : f32 to vector<8x128xf32>
    %43 = arith.subf %42, %39 : vector<8x128xf32>
    %44 = arith.select %41, %39, %43 : vector<8x128xi1>, vector<8x128xf32>
    %cst_19 = arith.constant 1.000000e+00 : f32
    %45 = vector.broadcast %cst_19 : f32 to vector<8x128xf32>
    %46 = arith.addf %45, %44 : vector<8x128xf32>
    %47 = arith.mulf %10, %46 : vector<8x128xf32>
    %c0_20 = arith.constant 0 : index
    %c0_21 = arith.constant 0 : index
    %48 = vector.load %arg8[%c0_20, %c0_21] : memref<8x128xf32, #tpu.memory_space<vmem>>, vector<8x128xf32>
    %49 = arith.truncf %47 : vector<8x128xf32> to vector<8x128xbf16>
    %c0_22 = arith.constant 0 : index
    %c0_23 = arith.constant 0 : index
    %50 = vector.load %arg5[%c0_22, %c0_23] : memref<128x128xbf16, #tpu.memory_space<vmem>>, vector<128x128xbf16>
    %cst_24 = arith.constant dense<0.000000e+00> : vector<8x128xf32>
    %51 = tpu.matmul %49, %50, %cst_24 {dimension_numbers = #tpu.dot_dimension_numbers<[1], [0], [0], [1], [0, 0, 1, 1], [], []>} : vector<8x128xbf16>, vector<128x128xbf16>, vector<8x128xf32> -> vector<8x128xf32>
    %52 = arith.addf %48, %51 : vector<8x128xf32>
    %c0_25 = arith.constant 0 : index
    %c0_26 = arith.constant 0 : index
    %53 = vector.load %arg8[%c0_25, %c0_26] : memref<8x128xf32, #tpu.memory_space<vmem>>, vector<8x128xf32>
    tpu.vector_store %arg8[%c0_25, %c0_26], %52 {strides = array<i32>} : memref<8x128xf32, #tpu.memory_space<vmem>>, vector<8x128xf32>,
    %c0_i32_27 = arith.constant 0 : i32
    %54 = arith.cmpi eq, %arg1, %c0_i32_27 : i32
    %55 = arith.extui %54 : i1 to i32
    %c0_i32_28 = arith.constant 0 : i32
    %56 = arith.cmpi ne, %55, %c0_i32_28 : i32
    scf.if %56 {
      %c0_29 = arith.constant 0 : index
      %c0_30 = arith.constant 0 : index
      %57 = vector.load %arg8[%c0_29, %c0_30] : memref<8x128xf32, #tpu.memory_space<vmem>>, vector<8x128xf32>
      %c0_31 = arith.constant 0 : index
      %c0_32 = arith.constant 0 : index
      %58 = vector.load %arg6[%c0_31, %c0_32] : memref<1x128xf32, #tpu.memory_space<vmem>>, vector<1x128xf32>
      %59 = vector.broadcast %58 : vector<1x128xf32> to vector<8x128xf32>
      %60 = arith.addf %57, %59 : vector<8x128xf32>
      %c0_33 = arith.constant 0 : index
      %c0_34 = arith.constant 0 : index
      %61 = vector.load %arg7[%c0_33, %c0_34] : memref<8x128xf32, #tpu.memory_space<vmem>>, vector<8x128xf32>
      tpu.vector_store %arg7[%c0_33, %c0_34], %60 {strides = array<i32>} : memref<8x128xf32, #tpu.memory_space<vmem>>, vector<8x128xf32>,
    } else {
    }
    return
  }
  func.func @transform_0(%arg0: i32, %arg1: i32) -> (i32, i32) {
    %c0_i32 = arith.constant 0 : i32
    %c0_i32_0 = arith.constant 0 : i32
    return %arg0, %c0_i32 : i32, i32
  }
  func.func @transform_1(%arg0: i32, %arg1: i32) -> (i32, i32) {
    %c0_i32 = arith.constant 0 : i32
    %c0_i32_0 = arith.constant 0 : i32
    return %c0_i32, %arg1 : i32, i32
  }
  func.func @transform_2(%arg0: i32, %arg1: i32) -> (i32, i32) {
    %c0_i32 = arith.constant 0 : i32
    %c0_i32_0 = arith.constant 0 : i32
    return %c0_i32, %arg1 : i32, i32
  }
  func.func @transform_3(%arg0: i32, %arg1: i32) -> (i32, i32) {
    %c0_i32 = arith.constant 0 : i32
    %c0_i32_0 = arith.constant 0 : i32
    return %arg1, %c0_i32 : i32, i32
  }
  func.func @transform_4(%arg0: i32, %arg1: i32) -> (i32, i32) {
    %c0_i32 = arith.constant 0 : i32
    %c0_i32_0 = arith.constant 0 : i32
    %c0_i32_1 = arith.constant 0 : i32
    return %c0_i32, %c0_i32_0 : i32, i32
  }
  func.func @transform_5(%arg0: i32, %arg1: i32) -> (i32, i32) {
    %c0_i32 = arith.constant 0 : i32
    %c0_i32_0 = arith.constant 0 : i32
    return %arg0, %c0_i32 : i32, i32
  }
}

</mosaic_0001>

<bundles_post_ra>
// kernel: tpu_custom_call.1
= control target key start
LH: loop header
LB: loop body
LE: loop exit
PB: predicated region body
PF: predicated region fallthrough
CT: control target
= control target key end

     0   :  { %10 = vsyncpa [#allocation4], 0  ;;  %s1376_s0 = inlined_call_operand.hbm [shape: bf16[16,128], index: 0, kind: input, shape index: {}]   ;;  %s1377_s1 = inlined_call_operand.hbm [shape: bf16[128,128], index: 1, kind: input, shape index: {}]   ;;  %s1378_s2 = inlined_call_operand.vmem [shape: f32[1,128], index: 2, kind: input, shape index: {}]   ;;  %s1379_s3 = inlined_call_operand.hbm [shape: bf16[128,128], index: 3, kind: input, shape index: {}]   ;;  %s1380_s4 = inlined_call_operand.vmem [shape: f32[1,128], index: 4, kind: input, shape index: {}]   ;;  %s1381_s5 = inlined_call_operand.hbm [shape: f32[16,128], index: 5, kind: output, shape index: {}]  }
   0x1   :  { %12 = vsyncpa [#allocation4 + $0x1], 0 }
   0x2   :  { %13 = vsyncpa [#allocation7], 0 }
   0x3   :  { %14 = vsyncpa [#allocation5], 0 }
   0x4   :  { %16 = vsyncpa [#allocation5 + $0x1], 0  ;;  %s1116_s18 = smov 0   ;;  %s1118_s19 = smov 0  }
   0x5   :  { %s1120_s20 = smov 0   ;;  %s1122_s21 = smov 0  }
   0x6   :  { %s1124_s22 = smov 0   ;;  %s1126_s23 = smov 0  }
   0x7 LB: > { %s703_s24 = sadd.s32 4294967295, %s1076_s23   ;;  %s704_s25 = sadd.s32 4294967294, %s1076_s23   ;;  %s1076_s23 = sphi %s1126_s23, %s22_s23   ;;  %s1072_s22 = sphi %s1124_s22, %s1403_s22   ;;  %s1068_s21 = sphi %s1122_s21, %s1402_s21   ;;  %s1064_s20 = sphi %s1120_s20, %s1401_s20   ;;  %s1060_s19 = sphi %s1118_s19, %s1400_s19   ;;  %s1056_s18 = sphi %s1116_s18, %s1399_s18  }
   0x8   : > { %p54_p0 = scmp.ne.s32.totalorder %s1060_s19, %s1056_s18  ;;  %p1150_p1 = scmp.eq.s32.totalorder %s703_s24, 0 }
   0x9   : > { %p1154_p2 = scmp.eq.s32.totalorder %s703_s24, 1  ;;  %p183_p3 = scmp.eq.s32.totalorder %s704_s25, 1 }
   0xa   : > { %s1386_s26 = scalar_select %p1150_p1, 1, 0 }
   0xb   : > { %p1160_p4 = por %p1150_p1, %p54_p0  ;;  %p705_p5 = scmp.ge.s32.totalorder %s1076_s23, 1 }
   0xc   : > { %p1165_p6 = por %p183_p3, %p54_p0  ;;  %p190_p7 = scmp.lt.s32.totalorder %s1076_s23, 3 }
   0xd   : > { %s1388_s28 = scalar_select %p1160_p4, 1, 0 }
   0xe   : > { %s1389_s29 = scalar_select %p1165_p6, 1, 0 }
   0xf   : > { %p1170_p8 = pnand %p705_p5, %p190_p7  ;;  %s1078_s6 = smov [#allocation6]  }
  0x10   : > { %s204_s7 = sshll.u32 %s1078_s6, 4  ;;  %s1079_s9 = smov [#allocation8]   ;;  %s1174_s7 = int_to_ptr.vmem [resolvable:$true] %s204_s7 }
  0x11   : > { %p809_p9 = pneg %p1170_p8  ;;  %s226_s10 = sshll.u32 %s1079_s9, 4  ;;  %s1185_s10 = int_to_ptr.vmem [resolvable:$true] %s226_s10 }
  0x12   : > { %s904_s13 = scalar_lea.hbm %s1377_s1, 1024 }
  0x13   : > { %p1181_p11 = pnand %p809_p9, %p1150_p1  ;;  %p905_p12 = scmp.ne.s32.totalorder %s1377_s1, %s904_s13 }
  0x14   : > { %p911_p5 = scmp.lt.u32.totalorder %s904_s13, %s1377_s1 }
  0x15   : > { %p906_p13 = pneg %p1181_p11 }
  0x17   : > { %p907_p0 = pnand %p906_p13, %p905_p12 }
  0x19   : > { %p908_p3 = pneg %p907_p0 }
  0x1b   : > { %p913_p7 = pnand %p911_p5, %p908_p3 }
  0x1d   : > { %916 = shalt.err (!%p913_p7)
}
  0x1e   : > { %s917_s24 = scalar_lea.vmem %s1174_s7, 1024  ;;  %p925_p1 = scmp.lt.s32.totalorder %s1174_s7, %s1174_s7 }
  0x1f   : > { %p918_p9 = scmp.ne.s32.totalorder %s1174_s7, %s917_s24  ;;  %p926_p12 = scmp.lt.s32.totalorder %s917_s24, %s917_s24 }
  0x21   : > { %p920_p10 = pnand %p918_p9, %p906_p13  ;;  %p927_p0 = por %p926_p12, %p925_p1 }
  0x23   : > { %p921_p6 = pneg %p920_p10 }
  0x25   : > { %p928_p4 = pnand %p927_p0, %p921_p6 }
  0x27   : > { %931 = shalt.err (!%p928_p4)
}
  0x28   : > { %s1080_s25 = smov 64   ;;  %s1081_s6 = smov 4  }
  0x29   : > { %812 = dma.hbm_to_vmem [thread:$0]  (!%p1181_p11), %s1377_s1, 1024, %s1174_s7, [#allocation7], %s1080_s25, %s1080_s25, %s1081_s6  }
  0x2a   : > { %s932_s14 = scalar_lea.hbm %s1379_s3, 1024 }
  0x2b   : > { %p933_p1 = scmp.ne.s32.totalorder %s1379_s3, %s932_s14  ;;  %p939_p10 = scmp.lt.u32.totalorder %s932_s14, %s1379_s3 }
  0x2d   : > { %p935_p4 = pnand %p933_p1, %p906_p13 }
  0x2f   : > { %p936_p6 = pneg %p935_p4 }
  0x31   : > { %p941_p3 = pnand %p939_p10, %p936_p6 }
  0x33   : > { %944 = shalt.err (!%p941_p3)
}
  0x34   : > { %s945_s7 = scalar_lea.vmem %s1185_s10, 1024  ;;  %p953_p12 = scmp.lt.s32.totalorder %s1185_s10, %s1185_s10 }
  0x35   : > { %p946_p5 = scmp.ne.s32.totalorder %s1185_s10, %s945_s7  ;;  %p954_p0 = scmp.lt.s32.totalorder %s945_s7, %s945_s7 }
  0x37   : > { %p948_p7 = pnand %p946_p5, %p906_p13  ;;  %p955_p1 = por %p954_p0, %p953_p12 }
  0x39   : > { %p949_p9 = pneg %p948_p7 }
  0x3b   : > { %p956_p4 = pnand %p955_p1, %p949_p9 }
  0x3d   : > { %959 = shalt.err (!%p956_p4)
}
  0x3e   : > { %815 = dma.hbm_to_vmem [thread:$0]  (!%p1181_p11), %s1379_s3, 1024, %s1185_s10, [#allocation7], %s1080_s25, %s1080_s25, %s1081_s6  }
  0x3f   : > { %s34_s12 = sadd.s32 1, %s1072_s22  ;;  %s41_s13 = sadd.s32 1, %s1064_s20 }
  0x40   : > { %p36_p13 = scmp.ge.s32.totalorder %s34_s12, 2  ;;  %p48_p6 = scmp.ne.s32.totalorder %s1064_s20, %s1060_s19 }
  0x41   : > { %p49_p10 = scmp.eq.s32.totalorder %s1076_s23, 0  ;;  %p826_p3 = scmp.lt.s32.totalorder %s1076_s23, 2 }
  0x42   : > { %s1405_s12 = smov (%p36_p13, %s34_s12), 0  ;;  %p1249_p7 = por %p1154_p2, %p48_p6 }
  0x43   : > { %p50_p5 = por %p49_p10, %p48_p6  ;;  %s38_s14 = ssub.s32 %s1072_s22, %s1405_s12 }
  0x44   : > { %s1392_s8 = scalar_select %p1249_p7, 1, 0 }
  0x45   : > { %s243_s15 = sand.u32 1, %s1064_s20   ;;  %p39_p9 = scmp.eq.s32.totalorder %s38_s14, 0 }
  0x46   : > { %s710_s10 = sshll.u32 %s243_s15, 2  ;;  %s711_s25 = sshll.u32 %s1072_s22, 6 }
  0x47   : > { %s1258_s6 = scalar_select %p39_p9, %s1064_s20, %s41_s13  }
  0x48   : > { %s1263_s24 = scalar_lea.hbm %s1376_s0, %s711_s25  ;;  %s247_s27 = scalar_lea.vmem [#allocation3], %s710_s10 }
  0x49   : > { %s254_s7 = sshll.u32 %s247_s27, 4  ;;  %p1267_p2 = pnand %p826_p3, %p50_p5  ;;  %s1271_s7 = int_to_ptr.vmem [resolvable:$true] %s254_s7 }
  0x4a   : > { %s244_s11 = scalar_lea.sflag [#allocation4], %s243_s15  ;;  %s960_s13 = scalar_lea.hbm %s1263_s24, 64 }
  0x4b   : > { %p961_p11 = scmp.ne.s32.totalorder %s1263_s24, %s960_s13  ;;  %p962_p12 = pneg %p1267_p2 }
  0x4c   : > { %s965_s25 = scalar_lea.hbm %s1376_s0, 128  ;;  %p966_p4 = scmp.lt.u32.totalorder %s1263_s24, %s1376_s0 }
  0x4d   : > { %p963_p0 = pnand %p962_p12, %p961_p11  ;;  %p967_p13 = scmp.lt.u32.totalorder %s965_s25, %s960_s13 }
  0x4e   : > { %p969_p10 = scmp.lt.u32.totalorder %s960_s13, %s1263_s24 }
  0x4f   : > { %p964_p1 = pneg %p963_p0  ;;  %p968_p6 = por %p967_p13, %p966_p4 }
  0x51   : > { %p970_p3 = por %p969_p10, %p968_p6 }
  0x53   : > { %p971_p5 = pnand %p970_p3, %p964_p1 }
  0x55   : > { %974 = shalt.err (!%p971_p5)
}
  0x56   : > { %s975_s15 = scalar_lea.vmem %s1271_s7, 64  ;;  %s1082_s27 = smov [#allocation3]  }
  0x57   : > { %p976_p9 = scmp.ne.s32.totalorder %s1271_s7, %s975_s15  ;;  %s980_s14 = sshll.u32 %s1082_s27, 4  ;;  %s981_s14 = int_to_ptr.vmem [resolvable:$false] %s980_s14 }
  0x58   : > { %s982_s10 = scalar_lea.vmem %s981_s14, 128  ;;  %p983_p7 = scmp.lt.s32.totalorder %s1271_s7, %s981_s14 }
  0x59   : > { %p978_p11 = pnand %p976_p9, %p962_p12  ;;  %p984_p4 = scmp.lt.s32.totalorder %s982_s10, %s975_s15 }
  0x5b   : > { %p979_p0 = pneg %p978_p11  ;;  %p985_p13 = por %p984_p4, %p983_p7 }
  0x5d   : > { %p986_p6 = pnand %p985_p13, %p979_p0 }
  0x5f   : > { %989 = shalt.err (!%p986_p6)
}
  0x60   : > { %819 = dma.hbm_to_vmem [thread:$0]  (!%p1267_p2), %s1263_s24, 64, %s1271_s7, %s244_s11  }
  0x61   : > { %263 = sbr.rel (%p1170_p8) target bundleno = 634 (0x27a), region = 40  ;;  %s1301_s13 = sand.u32 (!%p1170_p8), 1, %s1060_s19  }
  0x62   : > { %s713_s25 = sshll.u32 (!%p1170_p8), %s1301_s13, 2  ;;  %s266_s16 = scalar_lea.sflag (!%p1170_p8), [#allocation4], %s1301_s13 }
  0x63   : > { %s1305_s17 = scalar_lea.vmem (!%p1170_p8), [#allocation3], %s713_s25  ;;  %p1394_p7 = scmp.ne.s32.totalorder (!%p1170_p8), %s1388_s28, 0 }
  0x68   : > { %1043 = dma.done.wait (%p1394_p7), %s266_s16, 64  }
  0x69   : > { %1045 = vsyncadd (%p1394_p7), %s266_s16, 4294967232  ;;  %p1395_p2 = scmp.ne.s32.totalorder %s1386_s26, 0 }
  0x6b   : > { %1047 = dma.done.wait (%p1395_p2), [#allocation7], 2048  }
  0x6c   : > { %1049 = vsyncadd (%p1395_p2), [#allocation7], 4294965248  ;;  %v1083_v0 = vmov 0.0   ;;  %vm1084_vm0 = vmmov 0   ;;  %v884_v1 = vld [vmem:[#allocation6] sm:$0xff]   ;;  %v885_v2 = vld [vmem:[#allocation6 + $0x8] sm:$0xff]  }
  0x6d   : > { %757 = vmatprep.subr.bf16.mxu0 %v1083_v0  ;;  %773 = vmatprep.mubr.msk.bf16.mxu0 %vm1084_vm0, %v1083_v0  ;;  %v886_v3 = vld [vmem:[#allocation6 + $0x10] sm:$0xff]   ;;  %v887_v4 = vld [vmem:[#allocation6 + $0x18] sm:$0xff]   ;;  %v888_v5 = vld [vmem:[#allocation6 + $0x20] sm:$0xff]   ;;  %s716_s30 = sshll.u32 %s1301_s13, 3  ;;  %s736_s9 = sshll.u32 %s1068_s21, 7 }
  0x6e   : > { %777 = vmatprep.subr.bf16.mxu1 %v1083_v0  ;;  %793 = vmatprep.mubr.msk.bf16.mxu1 %vm1084_vm0, %v1083_v0  ;;  %v889_v6 = vld [vmem:[#allocation6 + $0x28] sm:$0xff]   ;;  %v890_v7 = vld [vmem:[#allocation6 + $0x30] sm:$0xff]   ;;  %v891_v8 = vld [vmem:[#allocation6 + $0x38] sm:$0xff]   ;;  %s306_s11 = scalar_lea.vmem [#allocation9], %s716_s30  ;;  %s1327_s10 = scalar_lea.hbm %s1381_s5, %s736_s9 }
  0x6f   : > { %758 = vmatpush3.bf16.msra.mxu0 %v884_v1  ;;  %v317_v9 = vld [vmem:[%s1305_s17] sm:$0xf]  ;;  %v892_v10 = vld [vmem:[#allocation8] sm:$0xff]   ;;  %v893_v11 = vld [vmem:[#allocation8 + $0x8] sm:$0xff]   ;;  %s590_s15 = sshll.u32 %s306_s11, 4  ;;  %s577_s25 = scalar_lea.sflag [#allocation5], %s1301_s13  ;;  %s1329_s15 = int_to_ptr.vmem [resolvable:$true] %s590_s15 }
  0x70   : > { %759 = vmatprep.subr.bf16.mxu0 %v1083_v0  ;;  %778 = vmatpush3.bf16.msra.mxu1 %v892_v10  ;;  %v894_v12 = vld [vmem:[#allocation8 + $0x10] sm:$0xff]   ;;  %v895_v13 = vld [vmem:[#allocation8 + $0x18] sm:$0xff]   ;;  %v896_v14 = vld [vmem:[#allocation8 + $0x20] sm:$0xff]   ;;  %s990_s21 = scalar_lea.vmem %s1329_s15, 128  ;;  %p1396_p12 = scmp.ne.s32.totalorder %s1392_s8, 0 }
  0x71   : > { %779 = vmatprep.subr.bf16.mxu1 %v1083_v0  ;;  %v897_v15 = vld [vmem:[#allocation8 + $0x28] sm:$0xff]   ;;  %v898_v16 = vld [vmem:[#allocation8 + $0x30] sm:$0xff]   ;;  %v899_v17 = vld [vmem:[#allocation8 + $0x38] sm:$0xff]   ;;  %p991_p8 = scmp.ne.s32.totalorder %s1329_s15, %s990_s21  ;;  %s1085_s16 = smov [#allocation9]  }
  0x72   : > { %v717_v18 = vld [vmem:[%s1378_s2] ss:$0 sm:$0xff]  ;;  %s994_s17 = sshll.u32 %s1085_s16, 4  ;;  %s995_s17 = int_to_ptr.vmem [resolvable:$false] %s994_s17 }
  0x73   : > { %760 = vmatpush3.bf16.msra.mxu0 %v885_v2  ;;  %v734_v50 = vld [vmem:[%s1380_s4] ss:$0 sm:$0xff]  ;;  %p992_p1 = pnand %p991_p8, %p1396_p12  ;;  %s996_s26 = scalar_lea.vmem %s995_s17, 256 }
  0x74   : > { %761 = vmatprep.subr.bf16.mxu0 %v1083_v0  ;;  %780 = vmatpush3.bf16.msra.mxu1 %v893_v11  ;;  %p997_p3 = scmp.lt.s32.totalorder %s1329_s15, %s995_s17  ;;  %p998_p5 = scmp.lt.s32.totalorder %s996_s26, %s990_s21 }
  0x75   : > { %781 = vmatprep.subr.bf16.mxu1 %v1083_v0  ;;  %p993_p10 = pneg %p992_p1 }
  0x76   : > { %p999_p9 = por %p998_p5, %p997_p3 }
  0x77   : > { %762 = vmatpush3.bf16.msra.mxu0 %v886_v3 }
  0x78   : > { %763 = vmatprep.subr.bf16.mxu0 %v1083_v0  ;;  %782 = vmatpush3.bf16.msra.mxu1 %v894_v12  ;;  %p1000_p11 = pnand %p999_p9, %p993_p10 }
  0x79   : > { %783 = vmatprep.subr.bf16.mxu1 %v1083_v0 }
  0x7b   : > { %764 = vmatpush3.bf16.msra.mxu0 %v887_v4 }
  0x7c   : > { %765 = vmatprep.subr.bf16.mxu0 %v1083_v0  ;;  %784 = vmatpush3.bf16.msra.mxu1 %v895_v13 }
  0x7d   : > { %785 = vmatprep.subr.bf16.mxu1 %v1083_v0 }
  0x7f   : > { %766 = vmatpush3.bf16.msra.mxu0 %v888_v5 }
  0x80   : > { %767 = vmatprep.subr.bf16.mxu0 %v1083_v0  ;;  %786 = vmatpush3.bf16.msra.mxu1 %v896_v14 }
  0x81   : > { %787 = vmatprep.subr.bf16.mxu1 %v1083_v0 }
  0x83   : > { %768 = vmatpush3.bf16.msra.mxu0 %v889_v6 }
  0x84   : > { %769 = vmatprep.subr.bf16.mxu0 %v1083_v0  ;;  %788 = vmatpush3.bf16.msra.mxu1 %v897_v15 }
  0x85   : > { %789 = vmatprep.subr.bf16.mxu1 %v1083_v0 }
  0x87   : > { %770 = vmatpush3.bf16.msra.mxu0 %v890_v7 }
  0x88   : > { %771 = vmatprep.subr.bf16.mxu0 %v1083_v0  ;;  %790 = vmatpush3.bf16.msra.mxu1 %v898_v16 }
  0x89   : > { %791 = vmatprep.subr.bf16.mxu1 %v1083_v0 }
  0x8b   : > { %772 = vmatpush3.bf16.msra.mxu0 %v891_v8 }
  0x8c   : > { %792 = vmatpush3.bf16.msra.mxu1 %v899_v17 }
  0x8e   : > { %774 = vmatmul.mubr.bf16.vlgmr.msra.gmra.mrb[0].mxu0 %v317_v9 }
 0x161   : > { %v423_v19 = vpop.f32.mrb[0].mxu0 }
 0x162   : > { %v424_v20 = vadd.f32 %v717_v18, %v423_v19  ;;  %v775_v21 = vpop.f32.mrb[1].mxu0 }
 0x163   : > { %v426_v22 = vpop.f32.mrb[2].mxu0 }
 0x164   : > { %v430_v23 = vmul.f32 0.70710677, %v424_v20  ;;  %v776_v24 = vpop.f32.mrb[3].mxu0  ;;  %v429_v46 = vmul.f32 0.5, %v424_v20 }
 0x166   : > { %v431_v25 = vand.u32 2147483647, %v430_v23  ;;  %vm450_vm1 = vcmp.ge.f32.partialorder %v430_v23, 0.0 }
 0x168   : > { %v432_v26 = vmul.f32 0.3275911, %v431_v25  ;;  %v444_v28 = vsub.f32 0.0, %v431_v25 }
 0x16a   : > { %v433_v27 = vadd.f32 1.0, %v432_v26  ;;  %v445_v30 = vmul.f32 %v444_v28, %v431_v25 }
 0x16c   : > { %900 = vrcp.f32 %v433_v27  ;;  %v446_v33 = vmul.f32 1.442695, %v445_v30 }
 0x16e   : > { %902 = vpow2.f32 %v446_v33 }
 0x176   : > { %v901_v29 = vpop.eup %900 }
 0x177   : > { %v435_v31 = vmul.f32 1.0614054, %v901_v29 }
 0x178   : > { %v903_v41 = vpop.eup %902 }
 0x179   : > { %v436_v32 = vadd.f32 -1.4531521, %v435_v31 }
 0x17b   : > { %v437_v34 = vmul.f32 %v901_v29, %v436_v32 }
 0x17d   : > { %v438_v35 = vadd.f32 1.4214138, %v437_v34 }
 0x17f   : > { %v439_v36 = vmul.f32 %v901_v29, %v438_v35 }
 0x181   : > { %v440_v37 = vadd.f32 -0.28449672, %v439_v36 }
 0x183   : > { %v441_v38 = vmul.f32 %v901_v29, %v440_v37 }
 0x185   : > { %v442_v39 = vadd.f32 0.2548296, %v441_v38 }
 0x187   : > { %v443_v40 = vmul.f32 %v901_v29, %v442_v39 }
 0x189   : > { %v448_v42 = vmul.f32 %v903_v41, %v443_v40 }
 0x18b   : > { %v449_v43 = vsub.f32 1.0, %v448_v42 }
 0x18d   : > { %v451_v44 = vsub.f32 0.0, %v449_v43 }
 0x18f   : > { %v452_v45 = vsel %vm450_vm1, %v449_v43, %v451_v44 }
 0x190   : > { %v453_v47 = vadd.f32 1.0, %v452_v45 }
 0x192   : > { %v454_v48 = vmul.f32 %v453_v47, %v429_v46 }
 0x194   : > { %v456_v49 = vpack.c.bf16 %v454_v48, %v454_v48 }
 0x196   : > { %794 = vmatmul.mubr.bf16.vlgmr.msra.gmra.mrb[0].mxu1 %v456_v49 }
 0x269   : > { %v555_v51 = vpop.f32.mrb[0].mxu1 }
 0x26a   : > { %v574_v52 = vadd.f32 %v734_v50, %v555_v51  ;;  %v795_v53 = vpop.f32.mrb[1].mxu1 }
 0x26b   : > { %v558_v54 = vpop.f32.mrb[2].mxu1 }
 0x26c   : > { %575 = vst [vmem:[%s306_s11] sm:$0xff] %v574_v52  ;;  %v796_v55 = vpop.f32.mrb[3].mxu1 }
 0x26d   : > { %1003 = shalt.err (!%p1000_p11)
}
 0x26e   : > { %s1004_s13 = scalar_lea.hbm %s1327_s10, 128  ;;  %s1008_s24 = scalar_lea.hbm %s1381_s5, 256 }
 0x26f   : > { %p1005_p0 = scmp.ne.s32.totalorder %s1327_s10, %s1004_s13  ;;  %p1009_p6 = scmp.lt.u32.totalorder %s1327_s10, %s1381_s5 }
 0x270   : > { %p1010_p7 = scmp.lt.u32.totalorder %s1008_s24, %s1004_s13  ;;  %p1012_p8 = scmp.lt.u32.totalorder %s1004_s13, %s1327_s10 }
 0x271   : > { %p1006_p4 = pnand %p1005_p0, %p1396_p12 }
 0x272   : > { %p1011_p2 = por %p1010_p7, %p1009_p6 }
 0x273   : > { %p1007_p13 = pneg %p1006_p4 }
 0x274   : > { %p1013_p1 = por %p1012_p8, %p1011_p2 }
 0x276   : > { %p1014_p10 = pnand %p1013_p1, %p1007_p13 }
 0x278   : > { %1017 = shalt.err (!%p1014_p10)
}
 0x279   : > { %807 = dma.vmem_to_hbm [thread:$0]  (%p1396_p12), %s1329_s15, 128, %s1327_s10, %s577_s25  }
 0x27a PF: > { %s602_s11 = sand.u32 1, %s1056_s18   ;;  %p1397_p3 = scmp.ne.s32.totalorder %s1389_s29, 0 }
 0x27b   : > { %p1398_p5 = scmp.ge.s32.totalorder %s1076_s23, 2  ;;  %s603_s27 = scalar_lea.sflag [#allocation5], %s602_s11 }
 0x27d   : > { %p821_p9 = pnand %p1398_p5, %p1397_p3 }
 0x27f   : > { %1051 = dma.done.wait (!%p821_p9), %s603_s27, 128  }
 0x280   : > { %1053 = vsyncadd (!%p821_p9), %s603_s27, 4294967168  ;;  %s22_s23 = sadd.s32 1, %s1076_s23   ;;  %s1399_s18 = smov %s1060_s19 }
 0x281   : > { %p19_p11 = scmp.ge.s32.totalorder %s22_s23, 4   ;;  %s1400_s19 = smov %s1064_s20 }
 0x282   : > { %s1401_s20 = smov %s1258_s6  ;;  %s1402_s21 = smov %s1072_s22 }
 0x283   : > { %s1403_s22 = smov %s1405_s12  ;;  %21 = sbr.rel (!%p19_p11) target bundleno = 7 (0x7), region = 106 }
 0x28a   :  { %608 = vsyncpa [#allocation4], 1 }
 0x28b   :  { %610 = vsyncpa [#allocation4 + $0x1], 1 }
 0x28c   :  { %611 = vsyncpa [#allocation7], 1 }
 0x28d   :  { %612 = vsyncpa [#allocation5], 1 }
 0x28e   :  { %614 = vsyncpa [#allocation5 + $0x1], 1 }

</bundles_post_ra>
